<compile_context>
chip_gen: v7x
topology: tpu7x:2x2x1
jax: 0.10.0
libtpu: 0.0.40
codegen_flags: <defaults>
</compile_context>

<pallas_src>
import numpy as np
import jax
import jax.numpy as jnp
from jax import lax
from jax.experimental import pallas as pl
from jax.experimental.pallas import tpu as pltpu


# ------------------------------- kernels -----------------------------------

def _noisy_linear_kernel(x_ref, wmu_ref, wsig_ref, eout_ref, ein_ref,
                         bmu_ref, bsig_ref, beps_ref, o_ref, acc_ref):
    k = pl.program_id(2)

    @pl.when(k == 0)
    def _():
        acc_ref[...] = jnp.zeros_like(acc_ref)

    # Rank-1 noise rebuilt on-chip: (TO,1) * (1,TK) broadcast -> (TO,TK).
    w = wmu_ref[...] + wsig_ref[...] * (eout_ref[...] * ein_ref[...])     # (TO, TK)

    # Contract I on both operands: x(TB,TK) . w(TO,TK) -> (TB,TO), no .T / XLU pass.
    acc_ref[...] += lax.dot_general(
        x_ref[...], w,
        dimension_numbers=(((1,), (1,)), ((), ())),
        preferred_element_type=jnp.float32)

    @pl.when(k == pl.num_programs(2) - 1)
    def _():
        b = bmu_ref[...] + bsig_ref[...] * beps_ref[...]                  # (1, TO)
        o_ref[...] = (acc_ref[...] + b).astype(o_ref.dtype)


def _plain_linear_kernel(x_ref, wmu_ref, bmu_ref, o_ref, acc_ref):
    k = pl.program_id(2)

    @pl.when(k == 0)
    def _():
        acc_ref[...] = jnp.zeros_like(acc_ref)

    acc_ref[...] += lax.dot_general(
        x_ref[...], wmu_ref[...],
        dimension_numbers=(((1,), (1,)), ((), ())),
        preferred_element_type=jnp.float32)

    @pl.when(k == pl.num_programs(2) - 1)
    def _():
        o_ref[...] = (acc_ref[...] + bmu_ref[...]).astype(o_ref.dtype)


# ------------------------------- wrapper ------------------------------------

def _round_up(n, m):
    return ((n + m - 1) // m) * m


def _vmem_limit_bytes(TB, TO, TK):
    f32 = 4
    per_step = (TB * TK            # x tile
                + 2 * TO * TK      # wmu + wsig tiles
                + TO + TK          # eps tiles
                + 3 * TO           # bias tiles
                + TB * TO          # output tile
                + TB * TO)         # f32 accumulator scratch
    need = 2 * per_step * f32 + (2 << 20)          # double-buffering + headroom
    # Keep under the 32 MiB scoped default so it is safe on v5e/v6e/v7x alike.
    return int(min(max(need, 8 << 20), 32 << 20))


def noisy_linear_forward(x, weights_mu, weights_sigma,
                         eps_out, eps_in,
                         bias_mu, bias_sigma, bias_epsilon,
                         training_noise=True):
    """Pallas TPU implementation of NoisyLinear.forward (factorized noise)."""
    B, I = x.shape
    O = weights_mu.shape[0]

    # Tile sizes: lane-dense (multiples of 128) on O/I, sublane-friendly on B.
    TB = min(_round_up(B, 8), 256)
    TO = min(_round_up(O, 128), 512)
    TK = min(_round_up(I, 128), 512)

    Bp, Op, Ip = _round_up(B, TB), _round_up(O, TO), _round_up(I, TK)
    grid = (Bp // TB, Op // TO, Ip // TK)

    xp = jnp.pad(x, ((0, Bp - B), (0, Ip - I)))
    wmu = jnp.pad(weights_mu, ((0, Op - O), (0, Ip - I)))
    bmu = jnp.pad(bias_mu, (0, Op - O)).reshape(1, Op)

    x_spec = pl.BlockSpec((TB, TK), lambda b, o, k: (b, k))
    w_spec = pl.BlockSpec((TO, TK), lambda b, o, k: (o, k))
    bias_spec = pl.BlockSpec((1, TO), lambda b, o, k: (0, o))
    out_spec = pl.BlockSpec((TB, TO), lambda b, o, k: (b, o))

    cparams = pltpu.CompilerParams(
        dimension_semantics=("parallel", "parallel", "arbitrary"),
        vmem_limit_bytes=_vmem_limit_bytes(TB, TO, TK))

    if training_noise:
        wsig = jnp.pad(weights_sigma, ((0, Op - O), (0, Ip - I)))
        eout = jnp.pad(eps_out.reshape(O, 1), ((0, Op - O), (0, 0)))
        ein = jnp.pad(eps_in.reshape(1, I), ((0, 0), (0, Ip - I)))
        bsig = jnp.pad(bias_sigma, (0, Op - O)).reshape(1, Op)
        beps = jnp.pad(bias_epsilon, (0, Op - O)).reshape(1, Op)

        yp = pl.pallas_call(
            _noisy_linear_kernel,
            out_shape=jax.ShapeDtypeStruct((Bp, Op), x.dtype),
            grid_spec=pltpu.PrefetchScalarGridSpec(
                num_scalar_prefetch=0,
                grid=grid,
                in_specs=[x_spec, w_spec, w_spec,
                          pl.BlockSpec((TO, 1), lambda b, o, k: (o, 0)),
                          pl.BlockSpec((1, TK), lambda b, o, k: (0, k)),
                          bias_spec, bias_spec, bias_spec],
                out_specs=out_spec,
                scratch_shapes=[pltpu.VMEM((TB, TO), jnp.float32)]),
            compiler_params=cparams,
        )(xp, wmu, wsig, eout, ein, bmu, bsig, beps)
    else:
        # Eval path: no epsilon / sigma traffic at all.
        yp = pl.pallas_call(
            _plain_linear_kernel,
            out_shape=jax.ShapeDtypeStruct((Bp, Op), x.dtype),
            grid_spec=pltpu.PrefetchScalarGridSpec(
                num_scalar_prefetch=0,
                grid=grid,
                in_specs=[x_spec, w_spec, bias_spec],
                out_specs=out_spec,
                scratch_shapes=[pltpu.VMEM((TB, TO), jnp.float32)]),
            compiler_params=cparams,
        )(xp, wmu, bmu)

    return yp[:B, :O]


# ------------------------- parameter / noise setup --------------------------

def scale_noise(key, size):
    # f(x) = sign(x) * sqrt(|x|), x ~ N(0, 1)   (NoisyNets factorized noise)
    x = jax.random.normal(key, (size,), dtype=jnp.float32)
    return jnp.sign(x) * jnp.sqrt(jnp.abs(x))


def init_noisy_linear(key, input_size, output_size, sigma_init=0.5):
    mu_range = 1.0 / np.sqrt(input_size)
    k_wmu, k_bmu, k_ein, k_eout, k_beps = jax.random.split(key, 5)

    weights_mu = jax.random.uniform(
        k_wmu, (output_size, input_size), jnp.float32, -mu_range, mu_range)
    weights_sigma = jnp.full((output_size, input_size),
                             sigma_init * mu_range, jnp.float32)
    bias_mu = jax.random.uniform(
        k_bmu, (output_size,), jnp.float32, -mu_range, mu_range)
    bias_sigma = jnp.full((output_size,), sigma_init * mu_range, jnp.float32)

    eps_in = scale_noise(k_ein, input_size)        # factorized noise kept as vectors
    eps_out = scale_noise(k_eout, output_size)
    bias_epsilon = scale_noise(k_beps, output_size)

    return dict(weights_mu=weights_mu, weights_sigma=weights_sigma,
                eps_in=eps_in, eps_out=eps_out,
                bias_mu=bias_mu, bias_sigma=bias_sigma,
                bias_epsilon=bias_epsilon)


if __name__ == "__main__":
    input_size, output_size, batch = 32, 64, 8

    key = jax.random.PRNGKey(0)
    k_params, k_x = jax.random.split(key)
    params = init_noisy_linear(k_params, input_size, output_size, sigma_init=0.5)
    x = jax.random.normal(k_x, (batch, input_size), dtype=jnp.float32)

    # --- training / noisy path ---
    y = noisy_linear_forward(
        x,
        params["weights_mu"], params["weights_sigma"],
        params["eps_out"], params["eps_in"],
        params["bias_mu"], params["bias_sigma"], params["bias_epsilon"],
        training_noise=True,
    )
    y = jax.block_until_ready(y)

    w_eff = (params["weights_mu"]
             + params["weights_sigma"] * jnp.outer(params["eps_out"], params["eps_in"]))
    b_eff = params["bias_mu"] + params["bias_sigma"] * params["bias_epsilon"]
    y_ref = x @ w_eff.T + b_eff
    np.testing.assert_allclose(np.asarray(y), np.asarray(y_ref),
                               rtol=1e-5, atol=1e-5)

    # --- eval / noiseless path ---
    y_eval = noisy_linear_forward(
        x,
        params["weights_mu"], params["weights_sigma"],
        params["eps_out"], params["eps_in"],
        params["bias_mu"], params["bias_sigma"], params["bias_epsilon"],
        training_noise=False,
    )
    y_eval = jax.block_until_ready(y_eval)
    y_eval_ref = x @ params["weights_mu"].T + params["bias_mu"]
    np.testing.assert_allclose(np.asarray(y_eval), np.asarray(y_eval_ref),
                               rtol=1e-5, atol=1e-5)

    print("KERNEL_OK")
</pallas_src>

<mosaic_0001>
module attributes {stable_mosaic.version = 11 : i64} {
  func.func @_noisy_linear_kernel(%arg0: i32, %arg1: i32, %arg2: i32, %arg3: memref<8x128xf32, #tpu.memory_space<vmem>>, %arg4: memref<128x128xf32, #tpu.memory_space<vmem>>, %arg5: memref<128x128xf32, #tpu.memory_space<vmem>>, %arg6: memref<128x1xf32, #tpu.memory_space<vmem>>, %arg7: memref<1x128xf32, #tpu.memory_space<vmem>>, %arg8: memref<1x128xf32, #tpu.memory_space<vmem>>, %arg9: memref<1x128xf32, #tpu.memory_space<vmem>>, %arg10: memref<1x128xf32, #tpu.memory_space<vmem>>, %arg11: memref<8x128xf32, #tpu.memory_space<vmem>>, %arg12: memref<8x128xf32, #tpu.memory_space<vmem>>) attributes {dimension_semantics = [#tpu.dimension_semantics<parallel>, #tpu.dimension_semantics<parallel>, #tpu.dimension_semantics<arbitrary>], iteration_bounds = array<i64: 1, 1, 1>, scalar_prefetch = 0 : i64, scratch_operands = 1 : i64, tpu.core_type = #tpu.core_type<tc>, window_params = [{transform_indices = @transform_0, window_bounds = array<i64: 8, 128>}, {transform_indices = @transform_1, window_bounds = array<i64: 128, 128>}, {transform_indices = @transform_2, window_bounds = array<i64: 128, 128>}, {transform_indices = @transform_3, window_bounds = array<i64: 128, 1>}, {transform_indices = @transform_4, window_bounds = array<i64: 1, 128>}, {transform_indices = @transform_5, window_bounds = array<i64: 1, 128>}, {transform_indices = @transform_6, window_bounds = array<i64: 1, 128>}, {transform_indices = @transform_7, window_bounds = array<i64: 1, 128>}, {transform_indices = @transform_8, window_bounds = array<i64: 8, 128>}]} {
    %c0_i32 = arith.constant 0 : i32
    %0 = arith.cmpi eq, %arg2, %c0_i32 : i32
    %1 = arith.extui %0 : i1 to i32
    %c0_i32_0 = arith.constant 0 : i32
    %2 = arith.cmpi ne, %1, %c0_i32_0 : i32
    scf.if %2 {
      %cst_16 = arith.constant 0.000000e+00 : f32
      %20 = vector.broadcast %cst_16 : f32 to vector<8x128xf32>
      %c0_17 = arith.constant 0 : index
      %c0_18 = arith.constant 0 : index
      %21 = vector.load %arg12[%c0_17, %c0_18] : memref<8x128xf32, #tpu.memory_space<vmem>>, vector<8x128xf32>
      tpu.vector_store %arg12[%c0_17, %c0_18], %20 {strides = array<i32>} : memref<8x128xf32, #tpu.memory_space<vmem>>, vector<8x128xf32>,
    } else {
    }
    %c0 = arith.constant 0 : index
    %c0_1 = arith.constant 0 : index
    %3 = vector.load %arg4[%c0, %c0_1] : memref<128x128xf32, #tpu.memory_space<vmem>>, vector<128x128xf32>
    %c0_2 = arith.constant 0 : index
    %c0_3 = arith.constant 0 : index
    %4 = vector.load %arg5[%c0_2, %c0_3] : memref<128x128xf32, #tpu.memory_space<vmem>>, vector<128x128xf32>
    %c0_4 = arith.constant 0 : index
    %c0_5 = arith.constant 0 : index
    %5 = vector.load %arg6[%c0_4, %c0_5] : memref<128x1xf32, #tpu.memory_space<vmem>>, vector<128x1xf32>
    %c0_6 = arith.constant 0 : index
    %c0_7 = arith.constant 0 : index
    %6 = vector.load %arg7[%c0_6, %c0_7] : memref<1x128xf32, #tpu.memory_space<vmem>>, vector<1x128xf32>
    %7 = vector.broadcast %5 : vector<128x1xf32> to vector<128x128xf32>
    %8 = vector.broadcast %6 : vector<1x128xf32> to vector<128x128xf32>
    %9 = arith.mulf %7, %8 : vector<128x128xf32>
    %10 = arith.mulf %4, %9 : vector<128x128xf32>
    %11 = arith.addf %3, %10 : vector<128x128xf32>
    %c0_8 = arith.constant 0 : index
    %c0_9 = arith.constant 0 : index
    %12 = vector.load %arg12[%c0_8, %c0_9] : memref<8x128xf32, #tpu.memory_space<vmem>>, vector<8x128xf32>
    %c0_10 = arith.constant 0 : index
    %c0_11 = arith.constant 0 : index
    %13 = vector.load %arg3[%c0_10, %c0_11] : memref<8x128xf32, #tpu.memory_space<vmem>>, vector<8x128xf32>
    %cst = arith.constant dense<0.000000e+00> : vector<8x128xf32>
    %14 = tpu.matmul %13, %11, %cst {dimension_numbers = #tpu.dot_dimension_numbers<[1], [1], [0], [0], [0, 0, 1, 0], [], []>} : vector<8x128xf32>, vector<128x128xf32>, vector<8x128xf32> -> vector<8x128xf32>
    %15 = arith.addf %12, %14 : vector<8x128xf32>
    %c0_12 = arith.constant 0 : index
    %c0_13 = arith.constant 0 : index
    %16 = vector.load %arg12[%c0_12, %c0_13] : memref<8x128xf32, #tpu.memory_space<vmem>>, vector<8x128xf32>
    tpu.vector_store %arg12[%c0_12, %c0_13], %15 {strides = array<i32>} : memref<8x128xf32, #tpu.memory_space<vmem>>, vector<8x128xf32>,
    %c0_i32_14 = arith.constant 0 : i32
    %17 = arith.cmpi eq, %arg2, %c0_i32_14 : i32
    %18 = arith.extui %17 : i1 to i32
    %c0_i32_15 = arith.constant 0 : i32
    %19 = arith.cmpi ne, %18, %c0_i32_15 : i32
    scf.if %19 {
      %c0_16 = arith.constant 0 : index
      %c0_17 = arith.constant 0 : index
      %20 = vector.load %arg8[%c0_16, %c0_17] : memref<1x128xf32, #tpu.memory_space<vmem>>, vector<1x128xf32>
      %c0_18 = arith.constant 0 : index
      %c0_19 = arith.constant 0 : index
      %21 = vector.load %arg9[%c0_18, %c0_19] : memref<1x128xf32, #tpu.memory_space<vmem>>, vector<1x128xf32>
      %c0_20 = arith.constant 0 : index
      %c0_21 = arith.constant 0 : index
      %22 = vector.load %arg10[%c0_20, %c0_21] : memref<1x128xf32, #tpu.memory_space<vmem>>, vector<1x128xf32>
      %23 = arith.mulf %21, %22 : vector<1x128xf32>
      %24 = arith.addf %20, %23 : vector<1x128xf32>
      %c0_22 = arith.constant 0 : index
      %c0_23 = arith.constant 0 : index
      %25 = vector.load %arg12[%c0_22, %c0_23] : memref<8x128xf32, #tpu.memory_space<vmem>>, vector<8x128xf32>
      %26 = vector.broadcast %24 : vector<1x128xf32> to vector<8x128xf32>
      %27 = arith.addf %25, %26 : vector<8x128xf32>
      %c0_24 = arith.constant 0 : index
      %c0_25 = arith.constant 0 : index
      %28 = vector.load %arg11[%c0_24, %c0_25] : memref<8x128xf32, #tpu.memory_space<vmem>>, vector<8x128xf32>
      tpu.vector_store %arg11[%c0_24, %c0_25], %27 {strides = array<i32>} : memref<8x128xf32, #tpu.memory_space<vmem>>, vector<8x128xf32>,
    } else {
    }
    return
  }
  func.func @transform_0(%arg0: i32, %arg1: i32, %arg2: i32) -> (i32, i32) {
    %c0_i32 = arith.constant 0 : i32
    return %arg0, %arg2 : i32, i32
  }
  func.func @transform_1(%arg0: i32, %arg1: i32, %arg2: i32) -> (i32, i32) {
    %c0_i32 = arith.constant 0 : i32
    return %arg1, %arg2 : i32, i32
  }
  func.func @transform_2(%arg0: i32, %arg1: i32, %arg2: i32) -> (i32, i32) {
    %c0_i32 = arith.constant 0 : i32
    return %arg1, %arg2 : i32, i32
  }
  func.func @transform_3(%arg0: i32, %arg1: i32, %arg2: i32) -> (i32, i32) {
    %c0_i32 = arith.constant 0 : i32
    %c0_i32_0 = arith.constant 0 : i32
    return %arg1, %c0_i32 : i32, i32
  }
  func.func @transform_4(%arg0: i32, %arg1: i32, %arg2: i32) -> (i32, i32) {
    %c0_i32 = arith.constant 0 : i32
    %c0_i32_0 = arith.constant 0 : i32
    return %c0_i32, %arg2 : i32, i32
  }
  func.func @transform_5(%arg0: i32, %arg1: i32, %arg2: i32) -> (i32, i32) {
    %c0_i32 = arith.constant 0 : i32
    %c0_i32_0 = arith.constant 0 : i32
    return %c0_i32, %arg1 : i32, i32
  }
  func.func @transform_6(%arg0: i32, %arg1: i32, %arg2: i32) -> (i32, i32) {
    %c0_i32 = arith.constant 0 : i32
    %c0_i32_0 = arith.constant 0 : i32
    return %c0_i32, %arg1 : i32, i32
  }
  func.func @transform_7(%arg0: i32, %arg1: i32, %arg2: i32) -> (i32, i32) {
    %c0_i32 = arith.constant 0 : i32
    %c0_i32_0 = arith.constant 0 : i32
    return %c0_i32, %arg1 : i32, i32
  }
  func.func @transform_8(%arg0: i32, %arg1: i32, %arg2: i32) -> (i32, i32) {
    %c0_i32 = arith.constant 0 : i32
    return %arg0, %arg1 : i32, i32
  }
}

</mosaic_0001>

<bundles_post_ra>
// kernel: tpu_custom_call.1
= control target key start
LH: loop header
LB: loop body
LE: loop exit
PB: predicated region body
PF: predicated region fallthrough
CT: control target
= control target key end

     0   :  { %13 = vsyncpa [#allocation4], 0  ;;  %s742_s0 = inlined_call_operand.hbm [shape: f32[8,128], index: 0, kind: input, shape index: {}]   ;;  %s743_s1 = inlined_call_operand.vmem [shape: f32[128,128], index: 1, kind: input, shape index: {}]   ;;  %s744_s2 = inlined_call_operand.hbm [shape: f32[128,128], index: 2, kind: input, shape index: {}]   ;;  %s745_s3 = inlined_call_operand.vmem [shape: f32[128,1], index: 3, kind: input, shape index: {}]   ;;  %s746_s4 = inlined_call_operand.vmem [shape: f32[1,128], index: 4, kind: input, shape index: {}]   ;;  %s747_s5 = inlined_call_operand.vmem [shape: f32[1,128], index: 5, kind: input, shape index: {}]   ;;  %s748_s6 = inlined_call_operand.vmem [shape: f32[1,128], index: 6, kind: input, shape index: {}]   ;;  %s749_s7 = inlined_call_operand.vmem [shape: f32[1,128], index: 7, kind: input, shape index: {}]   ;;  %s750_s8 = inlined_call_operand.hbm [shape: f32[8,128], index: 8, kind: output, shape index: {}]  }
   0x1   :  { %14 = vsyncpa [#allocation7], 0 }
   0x2   :  { %15 = vsyncpa [#allocation5], 0  ;;  %s511_s27 = smov [#allocation3]   ;;  %s512_s29 = smov [#allocation6]  }
   0x3   :  { %s22_s28 = sshll.u32 %s511_s27, 4  ;;  %s33_s30 = sshll.u32 %s512_s29, 4  ;;  %s23_s28 = int_to_ptr.vmem [resolvable:$true] %s22_s28  ;;  %s565_s30 = int_to_ptr.vmem [resolvable:$true] %s33_s30 }
   0x4   :  { %s439_s11 = scalar_lea.hbm %s742_s0, 128 }
   0x5   :  { %p440_p0 = scmp.ne.s32.totalorder %s742_s0, %s439_s11  ;;  %p443_p1 = scmp.lt.u32.totalorder %s439_s11, %s742_s0 }
   0x7   :  { %p445_p2 = pnand %p443_p1, %p440_p0 }
   0x9   :  { %448 = shalt.err (!%p445_p2)
}
   0xa   :  { %s449_s16 = scalar_lea.vmem %s23_s28, 128  ;;  %p454_p4 = scmp.lt.s32.totalorder %s23_s28, %s23_s28 }
   0xb   :  { %p450_p3 = scmp.ne.s32.totalorder %s23_s28, %s449_s16  ;;  %p455_p5 = scmp.lt.s32.totalorder %s449_s16, %s449_s16 }
   0xd   :  { %p456_p6 = por %p455_p5, %p454_p4 }
   0xf   :  { %p457_p7 = pnand %p456_p6, %p450_p3 }
  0x11   :  { %460 = shalt.err (!%p457_p7)
}
  0x12   :  { %25 = dma.hbm_to_vmem [thread:$0]  %s742_s0, 128, %s23_s28, [#allocation4]  }
  0x13   :  { %s461_s21 = scalar_lea.hbm %s744_s2, 2048 }
  0x14   :  { %p462_p8 = scmp.ne.s32.totalorder %s744_s2, %s461_s21  ;;  %p465_p9 = scmp.lt.u32.totalorder %s461_s21, %s744_s2 }
  0x16   :  { %p467_p10 = pnand %p465_p9, %p462_p8 }
  0x18   :  { %470 = shalt.err (!%p467_p10)
}
  0x19   :  { %s471_s26 = scalar_lea.vmem %s565_s30, 2048  ;;  %p476_p12 = scmp.lt.s32.totalorder %s565_s30, %s565_s30 }
  0x1a   :  { %p472_p11 = scmp.ne.s32.totalorder %s565_s30, %s471_s26  ;;  %p477_p13 = scmp.lt.s32.totalorder %s471_s26, %s471_s26 }
  0x1c   :  { %p478_p0 = por %p477_p13, %p476_p12 }
  0x1e   :  { %p479_p1 = pnand %p478_p0, %p472_p11 }
  0x20   :  { %482 = shalt.err (!%p479_p1)
}
  0x21   :  { %s513_s0 = smov 128   ;;  %s514_s27 = smov 8  }
  0x22   :  { %39 = dma.hbm_to_vmem [thread:$0]  %s744_s2, 2048, %s565_s30, [#allocation7], %s513_s0, %s513_s0, %s514_s27  }
  0x23   :  { %505 = dma.done.wait [#allocation4], 128  }
  0x24   :  { %506 = vsyncadd [#allocation4], 4294967168 }
  0x25   :  { %507 = dma.done.wait [#allocation7], 2048  }
  0x26   :  { %508 = vsyncadd [#allocation7], 4294965248  ;;  %v515_v0 = vmov 0   ;;  %v95_v1 = vld [vmem:[%s745_s3 + $0x10] sm:$0xff]  ;;  %v93_v2 = vld [vmem:[%s745_s3] sm:$0xff]  ;;  %v516_v9 = vmov 0.0|0.0  }
  0x27   :  { %438 = vset.pattern.permute.xlu1 %v515_v0  ;;  %437 = vset.pattern.permute.xlu0 %v515_v0  ;;  %v96_v3 = vld [vmem:[%s745_s3 + $0x18] sm:$0xff]  ;;  %v94_v4 = vld [vmem:[%s745_s3 + $0x8] sm:$0xff]  ;;  %v97_v6 = vld [vmem:[%s745_s3 + $0x20] sm:$0xff]  ;;  %vm517_vm0 = vmmov 0   ;;  %v518_v18 = vmov 0.0   ;;  %s519_s26 = smov [#allocation8]  }
  0x28   :  { %122 = vperm.xlu1 %438, %v95_v1   ;;  %112 = vperm.xlu0 %437, %v93_v2   ;;  %v98_v5 = vld [vmem:[%s745_s3 + $0x28] sm:$0xff]  ;;  %v100_v7 = vld [vmem:[%s745_s3 + $0x38] sm:$0xff]  ;;  %v99_v8 = vld [vmem:[%s745_s3 + $0x30] sm:$0xff]  ;;  %s341_s0 = sshll.u32 %s519_s26, 4  ;;  %s342_s0 = int_to_ptr.vmem [resolvable:$true] %s341_s0 }
  0x29   :  { %404 = vmatprep.subr.bf16.mxu0 %v516_v9  ;;  %v102_v10 = vld [vmem:[%s745_s3 + $0x48] sm:$0xff]  ;;  %v101_v11 = vld [vmem:[%s745_s3 + $0x40] sm:$0xff]  ;;  %v104_v12 = vld [vmem:[%s745_s3 + $0x58] sm:$0xff]  ;;  %401 = vmatprep.mubr.msk.f32.mxu0 %vm517_vm0, %v518_v18  ;;  %p488_p3 = scmp.lt.s32.totalorder %s342_s0, %s342_s0 }
  0x2a   :  { %v103_v13 = vld [vmem:[%s745_s3 + $0x50] sm:$0xff]  ;;  %v106_v14 = vld [vmem:[%s745_s3 + $0x68] sm:$0xff]  ;;  %v105_v15 = vld [vmem:[%s745_s3 + $0x60] sm:$0xff] }
  0x2b   :  { %v108_v16 = vld [vmem:[%s745_s3 + $0x78] sm:$0xff]  ;;  %v107_v17 = vld [vmem:[%s745_s3 + $0x70] sm:$0xff]  ;;  %v648_v19 = vld [vmem:[%s746_s4] ss:$0 sm:$0xff] }
  0x2c   :  { %127 = vperm.xlu1 %438, %v96_v3   ;;  %117 = vperm.xlu0 %437, %v94_v4   ;;  %v77_v23 = vld [vmem:[#allocation6] sm:$0xff]  ;;  %v78_v25 = vld [vmem:[#allocation6 + $0x8] sm:$0xff]  ;;  %v61_v29 = vld [vmem:[%s743_s1] sm:$0xff] }
  0x2d   :  { %v62_v30 = vld [vmem:[%s743_s1 + $0x8] sm:$0xff]  ;;  %v79_v34 = vld [vmem:[#allocation6 + $0x10] sm:$0xff]  ;;  %v80_v35 = vld [vmem:[#allocation6 + $0x18] sm:$0xff] }
  0x2e   :  { %v63_v41 = vld [vmem:[%s743_s1 + $0x10] sm:$0xff]  ;;  %v64_v42 = vld [vmem:[%s743_s1 + $0x18] sm:$0xff]  ;;  %v81_v50 = vld [vmem:[#allocation6 + $0x20] sm:$0xff] }
  0x2f   :  { %v82_v49 = vld [vmem:[#allocation6 + $0x28] sm:$0xff]  ;;  %v66_v54 = vld [vmem:[%s743_s1 + $0x28] sm:$0xff]  ;;  %v65_v55 = vld [vmem:[%s743_s1 + $0x20] sm:$0xff] }
  0x30   :  { %137 = vperm.xlu1 %438, %v98_v5   ;;  %132 = vperm.xlu0 %437, %v97_v6   ;;  %v84_v62 = vld [vmem:[#allocation6 + $0x38] sm:$0xff]  ;;  %v83_v63 = vld [vmem:[#allocation6 + $0x30] sm:$0xff]  ;;  %v67_v4 = vld [vmem:[%s743_s1 + $0x30] sm:$0xff] }
  0x31   :  { %v68_v3 = vld [vmem:[%s743_s1 + $0x38] sm:$0xff]  ;;  %v69_v18 = vld [vmem:[%s743_s1 + $0x40] sm:$0xff] }
  0x34   :  { %147 = vperm.xlu1 %438, %v100_v7   ;;  %142 = vperm.xlu0 %437, %v99_v8  }
  0x38   :  { %157 = vperm.xlu1 %438, %v102_v10   ;;  %152 = vperm.xlu0 %437, %v101_v11  }
  0x3c   :  { %167 = vperm.xlu1 %438, %v104_v12   ;;  %162 = vperm.xlu0 %437, %v103_v13   ;;  %v86_v12 = vld [vmem:[#allocation6 + $0x48] sm:$0xff]  ;;  %v85_v13 = vld [vmem:[#allocation6 + $0x40] sm:$0xff] }
  0x40   :  { %177 = vperm.xlu1 %438, %v106_v14   ;;  %172 = vperm.xlu0 %437, %v105_v15  }
  0x44   :  { %187 = vperm.xlu1 %438, %v108_v16   ;;  %182 = vperm.xlu0 %437, %v107_v17   ;;  %v70_v17 = vld [vmem:[%s743_s1 + $0x48] sm:$0xff] }
  0xa7   :  { %v123_v20 = vpop.permute.xlu1 %122  ;;  %v113_v21 = vpop.permute.xlu0 %112 }
  0xa8   :  { %v196_v22 = vmul.f32 %v648_v19, %v113_v21  ;;  %v198_v31 = vmul.f32 %v648_v19, %v123_v20 }
  0xaa   :  { %v212_v26 = vmul.f32 %v196_v22, %v77_v23  ;;  %v214_v38 = vmul.f32 %v198_v31, %v79_v34  ;;  %v72_v31 = vld [vmem:[%s743_s1 + $0x58] sm:$0xff] }
  0xab   :  { %v118_v24 = vpop.permute.xlu0 %117  ;;  %v128_v28 = vpop.permute.xlu1 %127 }
  0xac   :  { %v197_v27 = vmul.f32 %v648_v19, %v118_v24  ;;  %v199_v32 = vmul.f32 %v648_v19, %v128_v28  ;;  %v228_v36 = vadd.f32 %v212_v26, %v61_v29  ;;  %v230_v45 = vadd.f32 %v214_v38, %v63_v41  ;;  %v88_v26 = vld [vmem:[#allocation6 + $0x58] sm:$0xff] }
  0xae   :  { %v213_v33 = vmul.f32 %v197_v27, %v78_v25  ;;  %v215_v39 = vmul.f32 %v199_v32, %v80_v35  ;;  %v87_v27 = vld [vmem:[#allocation6 + $0x50] sm:$0xff]  ;;  %v71_v32 = vld [vmem:[%s743_s1 + $0x50] sm:$0xff] }
  0xaf   :  { %v138_v43 = vpop.permute.xlu1 %137  ;;  %v133_v44 = vpop.permute.xlu0 %132 }
  0xb0   :  { %v229_v37 = vadd.f32 %v213_v33, %v62_v30  ;;  %v231_v46 = vadd.f32 %v215_v39, %v64_v42  ;;  %v201_v47 = vmul.f32 %v648_v19, %v138_v43  ;;  %v200_v48 = vmul.f32 %v648_v19, %v133_v44  ;;  %v90_v39 = vld [vmem:[#allocation6 + $0x68] sm:$0xff]  ;;  %v74_v44 = vld [vmem:[%s743_s1 + $0x68] sm:$0xff] }
  0xb2   :  { %v405_v40 = vpack.c.bf16 %v229_v37, %v228_v36  ;;  %v217_v51 = vmul.f32 %v201_v47, %v82_v49  ;;  %v216_v52 = vmul.f32 %v200_v48, %v81_v50  ;;  %v408_v53 = vpack.c.bf16 %v231_v46, %v230_v45  ;;  %v73_v45 = vld [vmem:[%s743_s1 + $0x60] sm:$0xff] }
  0xb3   :  { %v148_v56 = vpop.permute.xlu1 %147  ;;  %v143_v57 = vpop.permute.xlu0 %142 }
  0xb4   :  { %406 = vmatpush3.bf16.xpose.msra.mxu0 %v405_v40  ;;  %v233_v58 = vadd.f32 %v217_v51, %v66_v54  ;;  %v232_v59 = vadd.f32 %v216_v52, %v65_v55  ;;  %v203_v60 = vmul.f32 %v648_v19, %v148_v56  ;;  %v202_v61 = vmul.f32 %v648_v19, %v143_v57  ;;  %v89_v40 = vld [vmem:[#allocation6 + $0x60] sm:$0xff]  ;;  %v92_v52 = vld [vmem:[#allocation6 + $0x78] sm:$0xff]  ;;  %v76_v57 = vld [vmem:[%s743_s1 + $0x78] sm:$0xff] }
  0xb5   :  { %407 = vmatprep.subr.bf16.mxu0 %v516_v9 }
  0xb6   :  { %v219_v0 = vmul.f32 %v203_v60, %v84_v62  ;;  %v218_v1 = vmul.f32 %v202_v61, %v83_v63  ;;  %v411_v2 = vpack.c.bf16 %v233_v58, %v232_v59  ;;  %v75_v58 = vld [vmem:[%s743_s1 + $0x70] sm:$0xff]  ;;  %v328_v62 = vlaneseq  ;;  %v322_v63 = vld [vmem:[%s748_s6] sm:$0x1]  ;;  %s483_s6 = scalar_lea.vmem %s342_s0, 128 }
  0xb7   :  { %v158_v5 = vpop.permute.xlu1 %157  ;;  %v153_v6 = vpop.permute.xlu0 %152  ;;  %p484_p2 = scmp.ne.s32.totalorder %s342_s0, %s483_s6  ;;  %p489_p4 = scmp.lt.s32.totalorder %s483_s6, %s483_s6 }
  0xb8   :  { %v235_v7 = vadd.f32 %v219_v0, %v68_v3  ;;  %v234_v8 = vadd.f32 %v218_v1, %v67_v4  ;;  %v205_v10 = vmul.f32 %v648_v19, %v158_v5  ;;  %v204_v11 = vmul.f32 %v648_v19, %v153_v6  ;;  %v323_v0 = vld [vmem:[%s749_s7] sm:$0x1] }
  0xb9   :  { %v324_v1 = vmul.f32 %v323_v0, %v322_v63  ;;  %p490_p5 = por %p489_p4, %p488_p3 }
  0xba   :  { %v221_v14 = vmul.f32 %v205_v10, %v86_v12  ;;  %v220_v15 = vmul.f32 %v204_v11, %v85_v13  ;;  %v414_v16 = vpack.c.bf16 %v235_v7, %v234_v8 }
  0xbb   :  { %v168_v20 = vpop.permute.xlu1 %167  ;;  %v163_v21 = vpop.permute.xlu0 %162  ;;  %p491_p6 = pnand %p490_p5, %p484_p2 }
  0xbc   :  { %409 = vmatpush3.bf16.xpose.msra.mxu0 %v408_v53  ;;  %v237_v22 = vadd.f32 %v221_v14, %v70_v17  ;;  %v236_v23 = vadd.f32 %v220_v15, %v69_v18  ;;  %v207_v24 = vmul.f32 %v648_v19, %v168_v20  ;;  %v206_v25 = vmul.f32 %v648_v19, %v163_v21  ;;  %v91_v53 = vld [vmem:[#allocation6 + $0x70] sm:$0xff] }
  0xbd   :  { %410 = vmatprep.subr.bf16.mxu0 %v516_v9 }
  0xbe   :  { %v223_v28 = vmul.f32 %v207_v24, %v88_v26  ;;  %v222_v29 = vmul.f32 %v206_v25, %v87_v27  ;;  %v417_v30 = vpack.c.bf16 %v237_v22, %v236_v23 }
  0xbf   :  { %v178_v33 = vpop.permute.xlu1 %177  ;;  %v173_v34 = vpop.permute.xlu0 %172 }
  0xc0   :  { %v239_v35 = vadd.f32 %v223_v28, %v72_v31  ;;  %v238_v36 = vadd.f32 %v222_v29, %v71_v32  ;;  %v209_v37 = vmul.f32 %v648_v19, %v178_v33  ;;  %v208_v38 = vmul.f32 %v648_v19, %v173_v34 }
  0xc2   :  { %v225_v41 = vmul.f32 %v209_v37, %v90_v39  ;;  %v224_v42 = vmul.f32 %v208_v38, %v89_v40  ;;  %v420_v43 = vpack.c.bf16 %v239_v35, %v238_v36 }
  0xc3   :  { %v188_v46 = vpop.permute.xlu1 %187  ;;  %v183_v47 = vpop.permute.xlu0 %182 }
  0xc4   :  { %412 = vmatpush3.bf16.xpose.msra.mxu0 %v411_v2  ;;  %v241_v48 = vadd.f32 %v225_v41, %v74_v44  ;;  %v240_v49 = vadd.f32 %v224_v42, %v73_v45  ;;  %v211_v50 = vmul.f32 %v648_v19, %v188_v46  ;;  %v210_v51 = vmul.f32 %v648_v19, %v183_v47  ;;  %v245_v19 = vld [vmem:[#allocation3] sm:$0xff] }
  0xc5   :  { %413 = vmatprep.subr.bf16.mxu0 %v516_v9  ;;  %v329_v2 = vshrl.u32 %v328_v62, 7 }
  0xc6   :  { %v227_v54 = vmul.f32 %v211_v50, %v92_v52  ;;  %v226_v55 = vmul.f32 %v210_v51, %v91_v53  ;;  %v423_v56 = vpack.c.bf16 %v241_v48, %v240_v49 }
  0xc7   :  { %v330_v4 = vsub.s32 0, %v329_v2 }
  0xc8   :  { %v243_v59 = vadd.f32 %v227_v54, %v76_v57  ;;  %v242_v60 = vadd.f32 %v226_v55, %v75_v58 }
  0xca   :  { %v426_v61 = vpack.c.bf16 %v243_v59, %v242_v60 }
  0xcc   :  { %415 = vmatpush3.bf16.xpose.msra.mxu0 %v414_v16 }
  0xcd   :  { %416 = vmatprep.subr.bf16.mxu0 %v516_v9 }
  0xd4   :  { %418 = vmatpush3.bf16.xpose.msra.mxu0 %v417_v30 }
  0xd5   :  { %419 = vmatprep.subr.bf16.mxu0 %v516_v9 }
  0xdc   :  { %421 = vmatpush3.bf16.xpose.msra.mxu0 %v420_v43 }
  0xdd   :  { %422 = vmatprep.subr.bf16.mxu0 %v516_v9 }
  0xe4   :  { %424 = vmatpush3.bf16.xpose.msra.mxu0 %v423_v56 }
  0xe5   :  { %425 = vmatprep.subr.bf16.mxu0 %v516_v9  ;;  %v321_v9 = vld [vmem:[%s747_s5] sm:$0x1] }
  0xe6   :  { %v325_v3 = vadd.f32 %v324_v1, %v321_v9 }
  0xe8   :  { %v331_v5 = vrot.slane %v325_v3, %v330_v4 }
  0xec   :  { %427 = vmatpush3.bf16.xpose.msra.mxu0 %v426_v61 }
  0xf3   :  { %402 = vmatmul.mubr.f32.vlgmr.msra.gmra.mrb[0].mxu0 %v245_v19 }
 0x1c6   :  { %v312_v6 = vpop.f32.mrb[0].mxu0 }
 0x1c7   :  { %v333_v7 = vadd.f32 %v331_v5, %v312_v6  ;;  %v403_v8 = vpop.f32.mrb[1].mxu0 }
 0x1c9   :  { %334 = vst [vmem:[#allocation8] sm:$0xff] %v333_v7 }
 0x1ca   :  { %494 = shalt.err (!%p491_p6)
}
 0x1cb   :  { %s495_s5 = scalar_lea.hbm %s750_s8, 128 }
 0x1cc   :  { %p496_p7 = scmp.ne.s32.totalorder %s750_s8, %s495_s5  ;;  %p499_p8 = scmp.lt.u32.totalorder %s495_s5, %s750_s8 }
 0x1ce   :  { %p501_p9 = pnand %p499_p8, %p496_p7 }
 0x1d0   :  { %504 = shalt.err (!%p501_p9)
}
 0x1d1   :  { %344 = dma.vmem_to_hbm [thread:$0]  %s342_s0, 128, %s750_s8, [#allocation5]  }
 0x1d2   :  { %509 = dma.done.wait [#allocation5], 128  }
 0x1d3   :  { %510 = vsyncadd [#allocation5], 4294967168 }
 0x1d4   :  { %348 = vsyncpa [#allocation4], 1 }
 0x1d5   :  { %349 = vsyncpa [#allocation7], 1 }
 0x1d6   :  { %350 = vsyncpa [#allocation5], 1 }

</bundles_post_ra>
